<compile_context>
chip_gen: v7x
topology: tpu7x:2x2x1
jax: 0.10.0
libtpu: 0.0.40
codegen_flags: <defaults>
</compile_context>

<pallas_src>
import jax
import jax.numpy as jnp
from jax import lax
from jax.experimental import pallas as pl
from jax.experimental.pallas import tpu as pltpu


_ALIGN = 16  # bf16 sublane-tile alignment for slab row blocks.


def _round_up(n, m):
    return ((n + m - 1) // m) * m


def pack_params(params, input_dim):
    """Pack all weights/biases into one bf16 (rows, max(D, H)) slab.

    Weights of l1..l4 are stored (out, in) in 16-row-aligned blocks at
    cols [0, in).  Layer-5's (1, H) weight is stored TRANSPOSED as an (H, 1)
    column so the kernel can do a VPU broadcast-MAC (no 1-row MXU pass).
    Biases are stored as columns (col 0) so they broadcast over (out, TILE_B).
    """
    H = params["l1"][0].shape[0]
    D = input_dim
    cols = max(D, H)

    w_rows = [H, H, H, H, H]      # l5 stored transposed -> H rows.
    b_rows = [H, H, H, H, 1]
    offs, row = [], 0
    for r in w_rows + b_rows:
        offs.append(row)
        row += _round_up(r, _ALIGN)
    total_rows = _round_up(row, _ALIGN)
    w_offs, b_offs = tuple(offs[:5]), tuple(offs[5:])

    slab = jnp.zeros((total_rows, cols), jnp.float32)
    for i, name in enumerate(("l1", "l2", "l3", "l4", "l5")):
        w, b = params[name]
        if name == "l5":
            slab = slab.at[w_offs[i]:w_offs[i] + H, 0].set(w[0, :])   # (H,) col
        else:
            kout, kin = w.shape
            slab = slab.at[w_offs[i]:w_offs[i] + kout, :kin].set(w)
        slab = slab.at[b_offs[i]:b_offs[i] + b.shape[0], 0].set(b)
    return slab.astype(jnp.bfloat16), w_offs, b_offs


def _make_kernel(D, H, w_offs, b_offs, natural_x):
    hidden_dims = [(H, D), (H, H), (H, H), (H, H)]   # layers 1..4 (out, in)

    def kernel(w_ref, x_ref, o_ref):
        def weight(layer):                              # bf16 (kout, kin)
            kout, kin = hidden_dims[layer]
            wo = w_offs[layer]
            return w_ref[wo:wo + kout, 0:kin]

        def bias(layer, kout):                          # f32 (kout, 1)
            bo = b_offs[layer]
            return w_ref[bo:bo + kout, 0:1].astype(jnp.float32)

        x = x_ref[...].astype(jnp.bfloat16)

        if natural_x:
            # x: (TILE_B, D).  Contract D on both operands so the result lands
            # batch-on-lanes -- the transpose rides the MXU op, not the host.
            z = lax.dot_general(weight(0), x, (((1,), (1,)), ((), ())),
                                preferred_element_type=jnp.float32)
        else:
            # Fallback layout: x pre-transposed on host to (D, TILE_B).
            z = jnp.dot(weight(0), x, preferred_element_type=jnp.float32)
        h = jnp.maximum(z + bias(0, H), 0.0)            # (H, TILE_B) f32

        for layer in (1, 2, 3):                          # bf16 MXU, f32 accum
            z = jnp.dot(weight(layer), h.astype(jnp.bfloat16),
                        preferred_element_type=jnp.float32)
            h = jnp.maximum(z + bias(layer, H), 0.0)

        # Layer 5 (kout = 1): VPU broadcast-MAC + sublane reduce; w5 is stored
        # transposed in the slab as an (H, 1) column.
        w5 = w_ref[w_offs[4]:w_offs[4] + H, 0:1].astype(jnp.float32)   # (H, 1)
        b5 = w_ref[b_offs[4]:b_offs[4] + 1, 0:1].astype(jnp.float32)   # (1, 1)
        z5 = jnp.sum(w5 * h, axis=0, keepdims=True) + b5               # (1, TB)

        # Sigmoid: exp on the EUP, approx reciprocal on the EUP.
        o_ref[...] = pl.reciprocal(1.0 + jnp.exp(-z5), approx=True)

    return kernel


def _choose_tile(batch, tile_b):
    """Lane-aligned batch tile; keep >= 2 grid steps for v7x megacore."""
    tile_b = max(128, (min(int(tile_b), 8192) // 128) * 128)
    b128 = _round_up(batch, 128)
    tile_b = min(tile_b, b128)
    if b128 >= 256:
        tile_b = min(tile_b, _round_up(b128 // 2, 128))
    return tile_b, _round_up(batch, tile_b)


def _pallas_forward(kernel, x_spec, x_arr, slab, padded_b, tile_b):
    num_tiles = padded_b // tile_b
    return pl.pallas_call(
        kernel,
        out_shape=jax.ShapeDtypeStruct((1, padded_b), jnp.float32),
        grid=(num_tiles,),
        in_specs=[
            # Packed bf16 weight/bias slab: constant block index -> resident.
            pl.BlockSpec(slab.shape, lambda i: (0, 0)),
            x_spec,
        ],
        out_specs=pl.BlockSpec((1, tile_b), lambda i: (0, i)),
        compiler_params=pltpu.CompilerParams(
            dimension_semantics=("parallel",)),
    )(slab, x_arr)


def ffnn_forward(x, params, *, tile_b=4096):
    """x: (B, input_dim) f32; params: dict l1..l5 of (W (out, in), b (out,))."""
    B, D = x.shape
    H = params["l1"][0].shape[0]
    slab, w_offs, b_offs = pack_params(params, D)
    tile_b, Bp = _choose_tile(B, tile_b)

    try:
        # Primary: stream x in its natural (B, D) layout (no host transpose).
        x_in = x if Bp == B else jnp.pad(x, ((0, Bp - B), (0, 0)))
        kern = _make_kernel(D, H, w_offs, b_offs, natural_x=True)
        out = _pallas_forward(
            kern, pl.BlockSpec((tile_b, D), lambda i: (i, 0)),
            x_in, slab, Bp, tile_b)
        out = jax.block_until_ready(out)
    except Exception:
        # TODO(synk): remove once the transposed-RHS dot is confirmed to lower
        # on every generation; this fallback pays one host transpose+pad pass.
        xt = jnp.zeros((D, Bp), jnp.float32).at[:, :B].set(x.T)
        kern = _make_kernel(D, H, w_offs, b_offs, natural_x=False)
        out = _pallas_forward(
            kern, pl.BlockSpec((D, tile_b), lambda i: (0, i)),
            xt, slab, Bp, tile_b)

    return out[0, :B].reshape(B, 1)


def init_params(key, input_dim, n_nodes_per_layer=8):
    """PyTorch-style init U(-1/sqrt(fan_in), 1/sqrt(fan_in)); W is (out, in)."""
    H = n_nodes_per_layer
    dims = [(H, input_dim), (H, H), (H, H), (H, H), (1, H)]
    params = {}
    for i, (fan_out, fan_in) in enumerate(dims, start=1):
        key, kw, kb = jax.random.split(key, 3)
        bound = 1.0 / (fan_in ** 0.5)
        w = jax.random.uniform(kw, (fan_out, fan_in), jnp.float32, -bound, bound)
        b = jax.random.uniform(kb, (fan_out,), jnp.float32, -bound, bound)
        params[f"l{i}"] = (w, b)
    return params


def ffnn_reference(x, params, mxu_bf16=False):
    """Pure-JAX reference.  mxu_bf16=True mirrors the kernel's precision:
    bf16-rounded dot operands for l1..l4, f32 accumulation, f32 h for l5."""
    if mxu_bf16:
        bf = lambda v: v.astype(jnp.bfloat16).astype(jnp.float32)
    else:
        bf = lambda v: v
    h = x
    for name in ("l1", "l2", "l3", "l4"):
        w, b = params[name]
        h = jnp.maximum(bf(h) @ bf(w).T + bf(b), 0.0)
    w, b = params["l5"]
    return jax.nn.sigmoid(h @ bf(w).T + bf(b))


if __name__ == "__main__":
    key = jax.random.PRNGKey(0)
    batch, input_dim, hidden = 500, 16, 8   # pads to 512 -> two 256-wide tiles

    key, kx = jax.random.split(key)
    x = jax.random.normal(kx, (batch, input_dim), jnp.float32)
    params = init_params(key, input_dim, n_nodes_per_layer=hidden)

    out = jax.block_until_ready(ffnn_forward(x, params))
    assert out.shape == (batch, 1), out.shape

    # Tight check vs. a kernel-precision (bf16-operand) reference, loose check
    # vs. the pure-f32 PyTorch-equivalent reference.
    ref_kp = ffnn_reference(x, params, mxu_bf16=True)
    ref_f32 = ffnn_reference(x, params, mxu_bf16=False)
    assert jnp.allclose(out, ref_kp, atol=1e-2), float(jnp.max(jnp.abs(out - ref_kp)))
    assert jnp.allclose(out, ref_f32, atol=5e-2), float(jnp.max(jnp.abs(out - ref_f32)))

    print("KERNEL_OK")
</pallas_src>

<mosaic_0001>
module attributes {stable_mosaic.version = 11 : i64} {
  func.func @kernel(%arg0: i32, %arg1: memref<160x16xbf16, #tpu.memory_space<vmem>>, %arg2: memref<256x16xf32, #tpu.memory_space<vmem>>, %arg3: memref<1x256xf32, #tpu.memory_space<vmem>>) attributes {dimension_semantics = [#tpu.dimension_semantics<parallel>], iteration_bounds = array<i64: 2>, scalar_prefetch = 0 : i64, scratch_operands = 0 : i64, tpu.core_type = #tpu.core_type<tc>, window_params = [{pipeline_mode = #tpu.pipeline_mode<synchronous>, transform_indices = @transform_0, window_bounds = array<i64: 160, 16>}, {transform_indices = @transform_1, window_bounds = array<i64: 256, 16>}, {transform_indices = @transform_2, window_bounds = array<i64: 1, 256>}]} {
    %c0 = arith.constant 0 : index
    %c0_0 = arith.constant 0 : index
    %0 = vector.load %arg2[%c0, %c0_0] : memref<256x16xf32, #tpu.memory_space<vmem>>, vector<256x16xf32>
    %1 = arith.truncf %0 : vector<256x16xf32> to vector<256x16xbf16>
    %c0_1 = arith.constant 0 : index
    %c0_2 = arith.constant 0 : index
    %2 = vector.load %arg1[%c0_1, %c0_2] : memref<160x16xbf16, #tpu.memory_space<vmem>>, vector<8x16xbf16>
    %cst = arith.constant dense<0.000000e+00> : vector<8x256xf32>
    %3 = tpu.matmul %2, %1, %cst {dimension_numbers = #tpu.dot_dimension_numbers<[1], [1], [0], [0], [0, 0, 1, 0], [], []>} : vector<8x16xbf16>, vector<256x16xbf16>, vector<8x256xf32> -> vector<8x256xf32>
    %c80 = arith.constant 80 : index
    %c0_3 = arith.constant 0 : index
    %4 = vector.load %arg1[%c80, %c0_3] : memref<160x16xbf16, #tpu.memory_space<vmem>>, vector<8x1xbf16>
    %5 = arith.extf %4 : vector<8x1xbf16> to vector<8x1xf32>
    %6 = vector.broadcast %5 : vector<8x1xf32> to vector<8x256xf32>
    %7 = arith.addf %3, %6 : vector<8x256xf32>
    %cst_4 = arith.constant 0.000000e+00 : f32
    %8 = vector.broadcast %cst_4 : f32 to vector<8x256xf32>
    %9 = arith.maximumf %7, %8 : vector<8x256xf32>
    %c16 = arith.constant 16 : index
    %c0_5 = arith.constant 0 : index
    %10 = vector.load %arg1[%c16, %c0_5] : memref<160x16xbf16, #tpu.memory_space<vmem>>, vector<8x8xbf16>
    %11 = arith.truncf %9 : vector<8x256xf32> to vector<8x256xbf16>
    %cst_6 = arith.constant dense<0.000000e+00> : vector<8x256xf32>
    %12 = tpu.matmul %10, %11, %cst_6 {dimension_numbers = #tpu.dot_dimension_numbers<[1], [0], [0], [1], [0, 0, 1, 1], [], []>} : vector<8x8xbf16>, vector<8x256xbf16>, vector<8x256xf32> -> vector<8x256xf32>
    %c96 = arith.constant 96 : index
    %c0_7 = arith.constant 0 : index
    %13 = vector.load %arg1[%c96, %c0_7] : memref<160x16xbf16, #tpu.memory_space<vmem>>, vector<8x1xbf16>
    %14 = arith.extf %13 : vector<8x1xbf16> to vector<8x1xf32>
    %15 = vector.broadcast %14 : vector<8x1xf32> to vector<8x256xf32>
    %16 = arith.addf %12, %15 : vector<8x256xf32>
    %cst_8 = arith.constant 0.000000e+00 : f32
    %17 = vector.broadcast %cst_8 : f32 to vector<8x256xf32>
    %18 = arith.maximumf %16, %17 : vector<8x256xf32>
    %c32 = arith.constant 32 : index
    %c0_9 = arith.constant 0 : index
    %19 = vector.load %arg1[%c32, %c0_9] : memref<160x16xbf16, #tpu.memory_space<vmem>>, vector<8x8xbf16>
    %20 = arith.truncf %18 : vector<8x256xf32> to vector<8x256xbf16>
    %cst_10 = arith.constant dense<0.000000e+00> : vector<8x256xf32>
    %21 = tpu.matmul %19, %20, %cst_10 {dimension_numbers = #tpu.dot_dimension_numbers<[1], [0], [0], [1], [0, 0, 1, 1], [], []>} : vector<8x8xbf16>, vector<8x256xbf16>, vector<8x256xf32> -> vector<8x256xf32>
    %c112 = arith.constant 112 : index
    %c0_11 = arith.constant 0 : index
    %22 = vector.load %arg1[%c112, %c0_11] : memref<160x16xbf16, #tpu.memory_space<vmem>>, vector<8x1xbf16>
    %23 = arith.extf %22 : vector<8x1xbf16> to vector<8x1xf32>
    %24 = vector.broadcast %23 : vector<8x1xf32> to vector<8x256xf32>
    %25 = arith.addf %21, %24 : vector<8x256xf32>
    %cst_12 = arith.constant 0.000000e+00 : f32
    %26 = vector.broadcast %cst_12 : f32 to vector<8x256xf32>
    %27 = arith.maximumf %25, %26 : vector<8x256xf32>
    %c48 = arith.constant 48 : index
    %c0_13 = arith.constant 0 : index
    %28 = vector.load %arg1[%c48, %c0_13] : memref<160x16xbf16, #tpu.memory_space<vmem>>, vector<8x8xbf16>
    %29 = arith.truncf %27 : vector<8x256xf32> to vector<8x256xbf16>
    %cst_14 = arith.constant dense<0.000000e+00> : vector<8x256xf32>
    %30 = tpu.matmul %28, %29, %cst_14 {dimension_numbers = #tpu.dot_dimension_numbers<[1], [0], [0], [1], [0, 0, 1, 1], [], []>} : vector<8x8xbf16>, vector<8x256xbf16>, vector<8x256xf32> -> vector<8x256xf32>
    %c128 = arith.constant 128 : index
    %c0_15 = arith.constant 0 : index
    %31 = vector.load %arg1[%c128, %c0_15] : memref<160x16xbf16, #tpu.memory_space<vmem>>, vector<8x1xbf16>
    %32 = arith.extf %31 : vector<8x1xbf16> to vector<8x1xf32>
    %33 = vector.broadcast %32 : vector<8x1xf32> to vector<8x256xf32>
    %34 = arith.addf %30, %33 : vector<8x256xf32>
    %cst_16 = arith.constant 0.000000e+00 : f32
    %35 = vector.broadcast %cst_16 : f32 to vector<8x256xf32>
    %36 = arith.maximumf %34, %35 : vector<8x256xf32>
    %c64 = arith.constant 64 : index
    %c0_17 = arith.constant 0 : index
    %37 = vector.load %arg1[%c64, %c0_17] : memref<160x16xbf16, #tpu.memory_space<vmem>>, vector<8x1xbf16>
    %38 = arith.extf %37 : vector<8x1xbf16> to vector<8x1xf32>
    %c144 = arith.constant 144 : index
    %c0_18 = arith.constant 0 : index
    %39 = vector.load %arg1[%c144, %c0_18] : memref<160x16xbf16, #tpu.memory_space<vmem>>, vector<1x1xbf16>
    %40 = arith.extf %39 : vector<1x1xbf16> to vector<1x1xf32>
    %41 = vector.broadcast %38 : vector<8x1xf32> to vector<8x256xf32>
    %42 = arith.mulf %41, %36 : vector<8x256xf32>
    %cst_19 = arith.constant dense<0.000000e+00> : vector<256xf32>
    %43 = vector.multi_reduction <add>, %42, %cst_19 [0] : vector<8x256xf32> to vector<256xf32>
    %44 = vector.shape_cast %43 : vector<256xf32> to vector<1x256xf32>
    %45 = vector.broadcast %40 : vector<1x1xf32> to vector<1x256xf32>
    %46 = arith.addf %44, %45 : vector<1x256xf32>
    %cst_20 = arith.constant 0.000000e+00 : f32
    %47 = vector.broadcast %cst_20 : f32 to vector<1x256xf32>
    %48 = arith.subf %47, %46 : vector<1x256xf32>
    %49 = math.exp %48 : vector<1x256xf32>
    %cst_21 = arith.constant 1.000000e+00 : f32
    %50 = vector.broadcast %cst_21 : f32 to vector<1x256xf32>
    %51 = arith.addf %50, %49 : vector<1x256xf32>
    %52 = tpu.reciprocal %51 {approx = true} : vector<1x256xf32> -> vector<1x256xf32>
    %c0_22 = arith.constant 0 : index
    %c0_23 = arith.constant 0 : index
    %53 = vector.load %arg3[%c0_22, %c0_23] : memref<1x256xf32, #tpu.memory_space<vmem>>, vector<1x256xf32>
    tpu.vector_store %arg3[%c0_22, %c0_23], %52 {strides = array<i32>} : memref<1x256xf32, #tpu.memory_space<vmem>>, vector<1x256xf32>,
    return
  }
  func.func @transform_0(%arg0: i32) -> (i32, i32) {
    %c0_i32 = arith.constant 0 : i32
    %c0_i32_0 = arith.constant 0 : i32
    %c0_i32_1 = arith.constant 0 : i32
    return %c0_i32, %c0_i32_0 : i32, i32
  }
  func.func @transform_1(%arg0: i32) -> (i32, i32) {
    %c0_i32 = arith.constant 0 : i32
    %c0_i32_0 = arith.constant 0 : i32
    return %arg0, %c0_i32 : i32, i32
  }
  func.func @transform_2(%arg0: i32) -> (i32, i32) {
    %c0_i32 = arith.constant 0 : i32
    %c0_i32_0 = arith.constant 0 : i32
    return %c0_i32, %arg0 : i32, i32
  }
}

module attributes {stable_mosaic.version = 11 : i64} {
  func.func @kernel(%arg0: i32, %arg1: memref<160x16xbf16, #tpu.memory_space<vmem>>, %arg2: memref<16x256xf32, #tpu.memory_space<vmem>>, %arg3: memref<1x256xf32, #tpu.memory_space<vmem>>) attributes {dimension_semantics = [#tpu.dimension_semantics<parallel>], iteration_bounds = array<i64: 2>, scalar_prefetch = 0 : i64, scratch_operands = 0 : i64, tpu.core_type = #tpu.core_type<tc>, window_params = [{pipeline_mode = #tpu.pipeline_mode<synchronous>, transform_indices = @transform_0, window_bounds = array<i64: 160, 16>}, {transform_indices = @transform_1, window_bounds = array<i64: 16, 256>}, {transform_indices = @transform_2, window_bounds = array<i64: 1, 256>}]} {
    %c0 = arith.constant 0 : index
    %c0_0 = arith.constant 0 : index
    %0 = vector.load %arg2[%c0, %c0_0] : memref<16x256xf32, #tpu.memory_space<vmem>>, vector<16x256xf32>
    %1 = arith.truncf %0 : vector<16x256xf32> to vector<16x256xbf16>
    %c0_1 = arith.constant 0 : index
    %c0_2 = arith.constant 0 : index
    %2 = vector.load %arg1[%c0_1, %c0_2] : memref<160x16xbf16, #tpu.memory_space<vmem>>, vector<8x16xbf16>
    %cst = arith.constant dense<0.000000e+00> : vector<8x256xf32>
    %3 = tpu.matmul %2, %1, %cst {dimension_numbers = #tpu.dot_dimension_numbers<[1], [0], [0], [1], [0, 0, 1, 1], [], []>} : vector<8x16xbf16>, vector<16x256xbf16>, vector<8x256xf32> -> vector<8x256xf32>
    %c80 = arith.constant 80 : index
    %c0_3 = arith.constant 0 : index
    %4 = vector.load %arg1[%c80, %c0_3] : memref<160x16xbf16, #tpu.memory_space<vmem>>, vector<8x1xbf16>
    %5 = arith.extf %4 : vector<8x1xbf16> to vector<8x1xf32>
    %6 = vector.broadcast %5 : vector<8x1xf32> to vector<8x256xf32>
    %7 = arith.addf %3, %6 : vector<8x256xf32>
    %cst_4 = arith.constant 0.000000e+00 : f32
    %8 = vector.broadcast %cst_4 : f32 to vector<8x256xf32>
    %9 = arith.maximumf %7, %8 : vector<8x256xf32>
    %c16 = arith.constant 16 : index
    %c0_5 = arith.constant 0 : index
    %10 = vector.load %arg1[%c16, %c0_5] : memref<160x16xbf16, #tpu.memory_space<vmem>>, vector<8x8xbf16>
    %11 = arith.truncf %9 : vector<8x256xf32> to vector<8x256xbf16>
    %cst_6 = arith.constant dense<0.000000e+00> : vector<8x256xf32>
    %12 = tpu.matmul %10, %11, %cst_6 {dimension_numbers = #tpu.dot_dimension_numbers<[1], [0], [0], [1], [0, 0, 1, 1], [], []>} : vector<8x8xbf16>, vector<8x256xbf16>, vector<8x256xf32> -> vector<8x256xf32>
    %c96 = arith.constant 96 : index
    %c0_7 = arith.constant 0 : index
    %13 = vector.load %arg1[%c96, %c0_7] : memref<160x16xbf16, #tpu.memory_space<vmem>>, vector<8x1xbf16>
    %14 = arith.extf %13 : vector<8x1xbf16> to vector<8x1xf32>
    %15 = vector.broadcast %14 : vector<8x1xf32> to vector<8x256xf32>
    %16 = arith.addf %12, %15 : vector<8x256xf32>
    %cst_8 = arith.constant 0.000000e+00 : f32
    %17 = vector.broadcast %cst_8 : f32 to vector<8x256xf32>
    %18 = arith.maximumf %16, %17 : vector<8x256xf32>
    %c32 = arith.constant 32 : index
    %c0_9 = arith.constant 0 : index
    %19 = vector.load %arg1[%c32, %c0_9] : memref<160x16xbf16, #tpu.memory_space<vmem>>, vector<8x8xbf16>
    %20 = arith.truncf %18 : vector<8x256xf32> to vector<8x256xbf16>
    %cst_10 = arith.constant dense<0.000000e+00> : vector<8x256xf32>
    %21 = tpu.matmul %19, %20, %cst_10 {dimension_numbers = #tpu.dot_dimension_numbers<[1], [0], [0], [1], [0, 0, 1, 1], [], []>} : vector<8x8xbf16>, vector<8x256xbf16>, vector<8x256xf32> -> vector<8x256xf32>
    %c112 = arith.constant 112 : index
    %c0_11 = arith.constant 0 : index
    %22 = vector.load %arg1[%c112, %c0_11] : memref<160x16xbf16, #tpu.memory_space<vmem>>, vector<8x1xbf16>
    %23 = arith.extf %22 : vector<8x1xbf16> to vector<8x1xf32>
    %24 = vector.broadcast %23 : vector<8x1xf32> to vector<8x256xf32>
    %25 = arith.addf %21, %24 : vector<8x256xf32>
    %cst_12 = arith.constant 0.000000e+00 : f32
    %26 = vector.broadcast %cst_12 : f32 to vector<8x256xf32>
    %27 = arith.maximumf %25, %26 : vector<8x256xf32>
    %c48 = arith.constant 48 : index
    %c0_13 = arith.constant 0 : index
    %28 = vector.load %arg1[%c48, %c0_13] : memref<160x16xbf16, #tpu.memory_space<vmem>>, vector<8x8xbf16>
    %29 = arith.truncf %27 : vector<8x256xf32> to vector<8x256xbf16>
    %cst_14 = arith.constant dense<0.000000e+00> : vector<8x256xf32>
    %30 = tpu.matmul %28, %29, %cst_14 {dimension_numbers = #tpu.dot_dimension_numbers<[1], [0], [0], [1], [0, 0, 1, 1], [], []>} : vector<8x8xbf16>, vector<8x256xbf16>, vector<8x256xf32> -> vector<8x256xf32>
    %c128 = arith.constant 128 : index
    %c0_15 = arith.constant 0 : index
    %31 = vector.load %arg1[%c128, %c0_15] : memref<160x16xbf16, #tpu.memory_space<vmem>>, vector<8x1xbf16>
    %32 = arith.extf %31 : vector<8x1xbf16> to vector<8x1xf32>
    %33 = vector.broadcast %32 : vector<8x1xf32> to vector<8x256xf32>
    %34 = arith.addf %30, %33 : vector<8x256xf32>
    %cst_16 = arith.constant 0.000000e+00 : f32
    %35 = vector.broadcast %cst_16 : f32 to vector<8x256xf32>
    %36 = arith.maximumf %34, %35 : vector<8x256xf32>
    %c64 = arith.constant 64 : index
    %c0_17 = arith.constant 0 : index
    %37 = vector.load %arg1[%c64, %c0_17] : memref<160x16xbf16, #tpu.memory_space<vmem>>, vector<8x1xbf16>
    %38 = arith.extf %37 : vector<8x1xbf16> to vector<8x1xf32>
    %c144 = arith.constant 144 : index
    %c0_18 = arith.constant 0 : index
    %39 = vector.load %arg1[%c144, %c0_18] : memref<160x16xbf16, #tpu.memory_space<vmem>>, vector<1x1xbf16>
    %40 = arith.extf %39 : vector<1x1xbf16> to vector<1x1xf32>
    %41 = vector.broadcast %38 : vector<8x1xf32> to vector<8x256xf32>
    %42 = arith.mulf %41, %36 : vector<8x256xf32>
    %cst_19 = arith.constant dense<0.000000e+00> : vector<256xf32>
    %43 = vector.multi_reduction <add>, %42, %cst_19 [0] : vector<8x256xf32> to vector<256xf32>
    %44 = vector.shape_cast %43 : vector<256xf32> to vector<1x256xf32>
    %45 = vector.broadcast %40 : vector<1x1xf32> to vector<1x256xf32>
    %46 = arith.addf %44, %45 : vector<1x256xf32>
    %cst_20 = arith.constant 0.000000e+00 : f32
    %47 = vector.broadcast %cst_20 : f32 to vector<1x256xf32>
    %48 = arith.subf %47, %46 : vector<1x256xf32>
    %49 = math.exp %48 : vector<1x256xf32>
    %cst_21 = arith.constant 1.000000e+00 : f32
    %50 = vector.broadcast %cst_21 : f32 to vector<1x256xf32>
    %51 = arith.addf %50, %49 : vector<1x256xf32>
    %52 = tpu.reciprocal %51 {approx = true} : vector<1x256xf32> -> vector<1x256xf32>
    %c0_22 = arith.constant 0 : index
    %c0_23 = arith.constant 0 : index
    %53 = vector.load %arg3[%c0_22, %c0_23] : memref<1x256xf32, #tpu.memory_space<vmem>>, vector<1x256xf32>
    tpu.vector_store %arg3[%c0_22, %c0_23], %52 {strides = array<i32>} : memref<1x256xf32, #tpu.memory_space<vmem>>, vector<1x256xf32>,
    return
  }
  func.func @transform_0(%arg0: i32) -> (i32, i32) {
    %c0_i32 = arith.constant 0 : i32
    %c0_i32_0 = arith.constant 0 : i32
    %c0_i32_1 = arith.constant 0 : i32
    return %c0_i32, %c0_i32_0 : i32, i32
  }
  func.func @transform_1(%arg0: i32) -> (i32, i32) {
    %c0_i32 = arith.constant 0 : i32
    %c0_i32_0 = arith.constant 0 : i32
    return %c0_i32, %arg0 : i32, i32
  }
  func.func @transform_2(%arg0: i32) -> (i32, i32) {
    %c0_i32 = arith.constant 0 : i32
    %c0_i32_0 = arith.constant 0 : i32
    return %c0_i32, %arg0 : i32, i32
  }
}

</mosaic_0001>

<bundles_post_ra>
// kernel: tpu_custom_call.1
= control target key start
LH: loop header
LB: loop body
LE: loop exit
PB: predicated region body
PF: predicated region fallthrough
CT: control target
= control target key end

     0   :  { %7 = vsyncpa [#allocation3], 0  ;;  %s998_s0 = inlined_call_operand.vmem [shape: bf16[160,16], index: 0, kind: input, shape index: {}]   ;;  %s999_s1 = inlined_call_operand.vmem [shape: f32[512,16], index: 1, kind: input, shape index: {}]   ;;  %s1000_s2 = inlined_call_operand.hbm [shape: f32[1,512], index: 2, kind: output, shape index: {}]  }
   0x1   :  { %9 = vsyncpa [#allocation3 + $0x1], 0  ;;  %s801_s9 = smov 0   ;;  %s803_s10 = smov 0  }
   0x2   :  { %s805_s11 = smov 0   ;;  %s807_s12 = smov 0  }
   0x3 LB: > { %s621_s13 = sadd.s32 4294967295, %s781_s12   ;;  %s622_s14 = sadd.s32 4294967294, %s781_s12   ;;  %s781_s12 = sphi %s807_s12, %s1006_s12   ;;  %s777_s11 = sphi %s805_s11, %s1005_s11   ;;  %s773_s10 = sphi %s803_s10, %s1004_s10   ;;  %s769_s9 = sphi %s801_s9, %s1003_s9  }
   0x4   : > { %s824_s15 = sadd.s32 1, %s781_s12   ;;  %s69_s16 = sadd.s32 1, %s777_s11 }
   0x5   : > { %s66_s17 = ssub.s32 %s781_s12, %s824_s15  ;;  %p79_p0 = scmp.ne.s32.totalorder %s777_s11, %s773_s10 }
   0x6   : > { %p67_p1 = scmp.eq.s32.totalorder %s66_s17, 0  ;;  %p80_p2 = scmp.eq.s32.totalorder %s621_s13, 1 }
   0x7   : > { %p85_p3 = scmp.ne.s32.totalorder %s773_s10, %s769_s9  ;;  %p86_p4 = scmp.eq.s32.totalorder %s622_s14, 1 }
   0x8   : > { %s834_s18 = scalar_select %p67_p1, %s777_s11, %s69_s16  }
   0x9   : > { %p836_p5 = por %p80_p2, %p79_p0  ;;  %p840_p6 = por %p86_p4, %p85_p3 }
   0xa   : > { %p625_p7 = scmp.ge.s32.totalorder %s781_s12, 1  ;;  %p116_p8 = scmp.lt.s32.totalorder %s781_s12, 3 }
   0xc   : > { %p117_p9 = pnand %p625_p7, %p116_p8 }
   0xd   : > { %s846_s21 = sshll.u32 (!%p117_p9), %s621_s13, 5  ;;  %vm202_vm0 = vcmask (!%p117_p9), 130048   ;;  %v851_v0 = vld [vmem:[%s998_s0] sm:$0xf] (!%p117_p9)  ;;  %v783_v1 = vmov (!%p117_p9), 0   ;;  %vm311_vm1 = vcmask (!%p117_p9), 1043456  }
   0xe   : > { %120 = sbr.rel (%p117_p9) target bundleno = 1043 (0x413), region = 28  ;;  %p139_p10 = scmp.lt.s32.totalorder (!%p117_p9), %s846_s21, 63  ;;  %658 = vmatprep.mubr.msk.bf16.mxu0 (!%p117_p9), %vm202_vm0, %v851_v0  ;;  %709 = vset.pattern.permute.xlu0 (!%p117_p9), %v783_v1  ;;  %v195_v2 = vld [vmem:[%s998_s0 + $0x28] ss:$8 sps:$4 sm:$0xff] (!%p117_p9)   ;;  %v866_v5 = vld [vmem:[%s998_s0 + $0x20] ss:$24 sps:$4 sm:$0xff] (!%p117_p9)  }
   0xf   : > { %v196_v3 = vunpack.c.l.bf16 (!%p117_p9), %v195_v2  ;;  %350 = vmatprep.mubr.bf16.mxu1 (!%p117_p9), %v783_v1  ;;  %710 = vset.pattern.permute.xlu1 (!%p117_p9), %v783_v1  ;;  %v301_v4 = vunpack.c.h.bf16 (!%p117_p9), %v195_v2  ;;  %v486_v13 = vunpack.c.l.bf16 (!%p117_p9), %v866_v5  ;;  %vm307_vm2 = vcmask (!%p117_p9), 64512   ;;  %s135_s24 = sand.u32 (!%p117_p9), 1, %s773_s10   ;;  %s956_s30 = scalar_lea.hbm (!%p117_p9), %s1000_s2, %s846_s21 }
  0x10   : > { %s626_s25 = sshll.u32 (!%p117_p9), %s135_s24, 1  ;;  %s549_s3 = scalar_lea.sflag (!%p117_p9), [#allocation3], %s135_s24 }
  0x11   : > { %199 = vperm.xlu0 (!%p117_p9), %709, %v196_v3   ;;  %s785_s5 = smov (!%p117_p9), [#allocation2]  }
  0x12   : > { %s723_s6 = sshll.u32 (!%p117_p9), %s785_s5, 4  ;;  %s724_s6 = int_to_ptr.vmem [resolvable:$false] %s723_s6 }
  0x13   : > { %s725_s7 = scalar_lea.vmem (!%p117_p9), %s724_s6, 64 }
  0x15   : > { %s140_s26 = scalar_select %p139_p10, %s846_s21, 63  ;;  %304 = vperm.xlu0 %709, %v301_v4  }
  0x17   : > { %s628_s27 = sshll.u32 %s140_s26, 3  ;;  %s137_s26 = scalar_lea.vmem [#allocation2], %s626_s25 }
  0x18   : > { %s871_s4 = scalar_lea.vmem %s999_s1, %s628_s27  ;;  %s563_s27 = sshll.u32 %s137_s26, 4  ;;  %s958_s27 = int_to_ptr.vmem [resolvable:$true] %s563_s27 }
  0x19   : > { %v162_v6 = vld [vmem:[%s871_s4 + $0x80] sm:$0xff]  ;;  %v163_v7 = vld [vmem:[%s871_s4 + $0x88] sm:$0xff]  ;;  %v164_v11 = vld [vmem:[%s871_s4 + $0x90] sm:$0xff]  ;;  %491 = vperm.xlu0 %709, %v486_v13   ;;  %p726_p0 = scmp.lt.s32.totalorder %s958_s27, %s724_s6 }
  0x1a   : > { %v146_v8 = vld [vmem:[%s871_s4] sm:$0xff]  ;;  %v186_v9 = vpack.c.bf16 %v163_v7, %v162_v6  ;;  %v147_v10 = vld [vmem:[%s871_s4 + $0x8] sm:$0xff]  ;;  %v165_v12 = vld [vmem:[%s871_s4 + $0x98] sm:$0xff] }
  0x1b   : > { %v178_v14 = vpack.c.bf16 %v147_v10, %v146_v8  ;;  %v187_v15 = vpack.c.bf16 %v165_v12, %v164_v11  ;;  %v148_v16 = vld [vmem:[%s871_s4 + $0x10] sm:$0xff]  ;;  %v149_v17 = vld [vmem:[%s871_s4 + $0x18] sm:$0xff]  ;;  %v166_v20 = vld [vmem:[%s871_s4 + $0xa0] sm:$0xff] }
  0x1c   : > { %660 = vmatprep.subr.msk.bf16.mxu0 %vm202_vm0, %v186_v9  ;;  %v179_v19 = vpack.c.bf16 %v149_v17, %v148_v16  ;;  %v167_v21 = vld [vmem:[%s871_s4 + $0xa8] sm:$0xff]  ;;  %v150_v24 = vld [vmem:[%s871_s4 + $0x20] sm:$0xff]  ;;  %v168_v27 = vld [vmem:[%s871_s4 + $0xb0] sm:$0xff] }
  0x1d   : > { %v207_v18 = vsel %vm202_vm0, %v178_v14, 0  ;;  %v188_v23 = vpack.c.bf16 %v167_v21, %v166_v20  ;;  %v151_v25 = vld [vmem:[%s871_s4 + $0x28] sm:$0xff]  ;;  %v169_v28 = vld [vmem:[%s871_s4 + $0xb8] sm:$0xff]  ;;  %v152_v31 = vld [vmem:[%s871_s4 + $0x30] sm:$0xff]  ;;  %v365_v14 = vunpack.c.h.bf16 %v866_v5 }
  0x1e   : > { %643 = vmatpush3.bf16.xpose.msra.mxu0 %v207_v18  ;;  %v210_v22 = vsel %vm202_vm0, %v179_v19, 0  ;;  %v180_v26 = vpack.c.bf16 %v151_v25, %v150_v24  ;;  %v189_v30 = vpack.c.bf16 %v169_v28, %v168_v27  ;;  %v153_v32 = vld [vmem:[%s871_s4 + $0x38] sm:$0xff]  ;;  %v170_v34 = vld [vmem:[%s871_s4 + $0xc0] sm:$0xff]  ;;  %v171_v35 = vld [vmem:[%s871_s4 + $0xc8] sm:$0xff] }
  0x1f   : > { %661 = vmatprep.subr.msk.bf16.mxu0 %vm202_vm0, %v187_v15  ;;  %v181_v33 = vpack.c.bf16 %v153_v32, %v152_v31  ;;  %v190_v37 = vpack.c.bf16 %v171_v35, %v170_v34  ;;  %v154_v38 = vld [vmem:[%s871_s4 + $0x40] sm:$0xff]  ;;  %v155_v39 = vld [vmem:[%s871_s4 + $0x48] sm:$0xff]  ;;  %v172_v41 = vld [vmem:[%s871_s4 + $0xd0] sm:$0xff]  ;;  %368 = vperm.xlu1 %710, %v365_v14  }
  0x20   : > { %v213_v29 = vsel %vm202_vm0, %v180_v26, 0  ;;  %v182_v40 = vpack.c.bf16 %v155_v39, %v154_v38  ;;  %v173_v42 = vld [vmem:[%s871_s4 + $0xd8] sm:$0xff]  ;;  %v156_v45 = vld [vmem:[%s871_s4 + $0x50] sm:$0xff]  ;;  %v174_v48 = vld [vmem:[%s871_s4 + $0xe0] sm:$0xff] }
  0x21   : > { %v216_v36 = vsel %vm202_vm0, %v181_v33, 0  ;;  %v191_v44 = vpack.c.bf16 %v173_v42, %v172_v41  ;;  %v157_v46 = vld [vmem:[%s871_s4 + $0x58] sm:$0xff]  ;;  %v175_v49 = vld [vmem:[%s871_s4 + $0xe8] sm:$0xff]  ;;  %v158_v52 = vld [vmem:[%s871_s4 + $0x60] sm:$0xff] }
  0x22   : > { %v219_v43 = vsel %vm202_vm0, %v182_v40, 0  ;;  %v183_v47 = vpack.c.bf16 %v157_v46, %v156_v45  ;;  %v192_v51 = vpack.c.bf16 %v175_v49, %v174_v48  ;;  %v159_v53 = vld [vmem:[%s871_s4 + $0x68] sm:$0xff]  ;;  %v176_v55 = vld [vmem:[%s871_s4 + $0xf0] sm:$0xff]  ;;  %v177_v56 = vld [vmem:[%s871_s4 + $0xf8] sm:$0xff] }
  0x23   : > { %v184_v54 = vpack.c.bf16 %v159_v53, %v158_v52  ;;  %v193_v58 = vpack.c.bf16 %v177_v56, %v176_v55  ;;  %v160_v59 = vld [vmem:[%s871_s4 + $0x70] sm:$0xff]  ;;  %v161_v60 = vld [vmem:[%s871_s4 + $0x78] sm:$0xff]  ;;  %v426_v15 = vld [vmem:[%s998_s0 + $0x40] sm:$0xf]  ;;  %s719_s4 = scalar_lea.vmem %s958_s27, 32 }
  0x24   : > { %v222_v50 = vsel %vm202_vm0, %v183_v47, 0  ;;  %v185_v61 = vpack.c.bf16 %v161_v60, %v160_v59  ;;  %v427_v16 = vunpack.c.l.bf16 %v426_v15  ;;  %v487_v17 = vld [vmem:[%s998_s0 + $0x48] sm:$0x1]  ;;  %p720_p11 = scmp.ne.s32.totalorder %s958_s27, %s719_s4  ;;  %p727_p1 = scmp.lt.s32.totalorder %s725_s7, %s719_s4 }
  0x25   : > { %v225_v57 = vsel %vm202_vm0, %v184_v54, 0  ;;  %v488_v18 = vunpack.c.l.bf16 %v487_v17 }
  0x26   : > { %645 = vmatpush3.bf16.xpose.msra.mxu0 %v210_v22  ;;  %v228_v62 = vsel %vm202_vm0, %v185_v61, 0  ;;  %430 = vperm.xlu1 %710, %v427_v16   ;;  %v784_v16 = vmov 1966171168   ;;  %p721_p12 = pnand %p720_p11, %p836_p5  ;;  %p728_p2 = por %p727_p1, %p726_p0 }
  0x27   : > { %662 = vmatprep.subr.msk.bf16.mxu0 %vm202_vm0, %v188_v23  ;;  %v529_v17 = vunpack.c.l.s4 %v784_v16 }
  0x28   : > { %p722_p13 = pneg %p721_p12 }
  0x2a   : > { %510 = vperm.xlu1 %710, %v488_v18   ;;  %v531_v18 = vlaneseq  ;;  %p729_p3 = pnand %p728_p2, %p722_p13 }
  0x2c   : > { %vm545_vm3 = vcmp.lt.s32.totalorder %v531_v18, 256 }
  0x2e   : > { %647 = vmatpush3.bf16.xpose.msra.mxu0 %v213_v29 }
  0x2f   : > { %663 = vmatprep.subr.msk.bf16.mxu0 %vm202_vm0, %v189_v30  ;;  %v361_v30 = vld [vmem:[%s998_s0 + $0x10] sm:$0xf] }
  0x36   : > { %649 = vmatpush3.bf16.xpose.msra.mxu0 %v216_v36 }
  0x37   : > { %664 = vmatprep.subr.msk.bf16.mxu0 %vm202_vm0, %v190_v37 }
  0x3e   : > { %651 = vmatpush3.bf16.xpose.msra.mxu0 %v219_v43 }
  0x3f   : > { %665 = vmatprep.subr.msk.bf16.mxu0 %vm202_vm0, %v191_v44 }
  0x46   : > { %653 = vmatpush3.bf16.xpose.msra.mxu0 %v222_v50 }
  0x47   : > { %666 = vmatprep.subr.msk.bf16.mxu0 %vm202_vm0, %v192_v51 }
  0x4e   : > { %655 = vmatpush3.bf16.xpose.msra.mxu0 %v225_v57 }
  0x4f   : > { %667 = vmatprep.subr.msk.bf16.mxu0 %vm202_vm0, %v193_v58 }
  0x56   : > { %657 = vmatpush3.bf16.xpose.msra.mxu0 %v228_v62 }
  0x5d   : > { %659 = vmatmul.mubr.msk.bf16.vlgmr.msra.gmra.mrb[0].mxu0 %vm202_vm0, %v851_v0  ;;  %v297_v0 = vld [vmem:[%s998_s0 + $0x8] sm:$0xf] }
  0x90   : > { %v200_v63 = vpop.permute.xlu0 %199 }
  0x94   : > { %v305_v19 = vpop.permute.xlu0 %304 }
  0x98   : > { %v492_v51 = vpop.permute.xlu0 %491 }
  0x9e   : > { %v369_v31 = vpop.permute.xlu1 %368 }
  0xa5   : > { %v431_v43 = vpop.permute.xlu1 %430 }
 0x130   : > { %v288_v2 = vpop.f32.mrb[0].mxu0 }
 0x131   : > { %v289_v3 = vadd.f32 %v288_v2, %v200_v63  ;;  %v290_v4 = vpop.f32.mrb[1].mxu0 }
 0x132   : > { %v291_v6 = vadd.f32 %v290_v4, %v200_v63  ;;  %v292_v7 = vpop.f32.mrb[2].mxu0  ;;  %v511_v4 = vpop.permute.xlu1 %510 }
 0x133   : > { %v295_v8 = vmax.f32 %v289_v3, 0.0  ;;  %v293_v9 = vpop.f32.mrb[3].mxu0 }
 0x134   : > { %v296_v10 = vmax.f32 %v291_v6, 0.0 }
 0x135   : > { %v298_v11 = vpack.c.bf16 %v295_v8, %v295_v8 }
 0x136   : > { %v299_v12 = vpack.c.bf16 %v296_v10, %v296_v10 }
 0x137   : > { %v313_v13 = vsel %vm311_vm1, %v298_v11, 0 }
 0x138   : > { %630 = vmatprep.subr.msk.bf16.mxu1 %vm311_vm1, %v299_v12 }
 0x139   : > { %319 = vmatpush1.bf16.msra.mxu1 %v313_v13 }
 0x13c   : > { %631 = vmatmul.mubr.msk.bf16.vlgmr.msra.gmra.mrb[0].mxu1 %vm307_vm2, %v297_v0 }
 0x13d   : > { %412 = vmatprep.mubr.bf16.mxu1 %v783_v1 }
 0x20f   : > { %v352_v20 = vpop.f32.mrb[0].mxu1 }
 0x210   : > { %v353_v21 = vadd.f32 %v352_v20, %v305_v19  ;;  %v354_v22 = vpop.f32.mrb[1].mxu1  ;;  %v532_v20 = vshrl.u32 %v531_v18, 7 }
 0x211   : > { %v355_v23 = vadd.f32 %v354_v22, %v305_v19  ;;  %v356_v24 = vpop.f32.mrb[2].mxu1  ;;  %v530_v19 = vunpack.c.0.s8 %v529_v17 }
 0x212   : > { %v359_v5 = vmax.f32 %v353_v21, 0.0  ;;  %v357_v25 = vpop.f32.mrb[3].mxu1 }
 0x213   : > { %v360_v26 = vmax.f32 %v355_v23, 0.0  ;;  %v533_v22 = vsub.s32 %v530_v19, %v532_v20 }
 0x214   : > { %v362_v27 = vpack.c.bf16 %v359_v5, %v359_v5 }
 0x215   : > { %v363_v28 = vpack.c.bf16 %v360_v26, %v360_v26 }
 0x216   : > { %v375_v29 = vsel %vm311_vm1, %v362_v27, 0 }
 0x217   : > { %632 = vmatprep.subr.msk.bf16.mxu1 %vm311_vm1, %v363_v28 }
 0x218   : > { %381 = vmatpush1.bf16.msra.mxu1 %v375_v29 }
 0x21b   : > { %633 = vmatmul.mubr.msk.bf16.vlgmr.msra.gmra.mrb[4].mxu1 %vm307_vm2, %v361_v30 }
 0x21c   : > { %474 = vmatprep.mubr.bf16.mxu1 %v783_v1  ;;  %v423_v1 = vld [vmem:[%s998_s0 + $0x18] sm:$0xf] }
 0x2ee   : > { %v414_v32 = vpop.f32.mrb[4].mxu1 }
 0x2ef   : > { %v415_v33 = vadd.f32 %v414_v32, %v369_v31  ;;  %v416_v34 = vpop.f32.mrb[5].mxu1 }
 0x2f0   : > { %v417_v35 = vadd.f32 %v416_v34, %v369_v31  ;;  %v418_v36 = vpop.f32.mrb[6].mxu1 }
 0x2f1   : > { %v421_v37 = vmax.f32 %v415_v33, 0.0  ;;  %v419_v38 = vpop.f32.mrb[7].mxu1 }
 0x2f2   : > { %v422_v39 = vmax.f32 %v417_v35, 0.0 }
 0x2f3   : > { %v424_v40 = vpack.c.bf16 %v421_v37, %v421_v37 }
 0x2f4   : > { %v425_v41 = vpack.c.bf16 %v422_v39, %v422_v39 }
 0x2f5   : > { %v437_v42 = vsel %vm311_vm1, %v424_v40, 0 }
 0x2f6   : > { %634 = vmatprep.subr.msk.bf16.mxu1 %vm311_vm1, %v425_v41 }
 0x2f7   : > { %443 = vmatpush1.bf16.msra.mxu1 %v437_v42 }
 0x2fa   : > { %635 = vmatmul.mubr.msk.bf16.vlgmr.msra.gmra.mrb[8].mxu1 %vm307_vm2, %v423_v1 }
 0x3cd   : > { %v476_v44 = vpop.f32.mrb[8].mxu1 }
 0x3ce   : > { %v477_v45 = vadd.f32 %v476_v44, %v431_v43  ;;  %v478_v46 = vpop.f32.mrb[9].mxu1 }
 0x3cf   : > { %v479_v47 = vadd.f32 %v478_v46, %v431_v43  ;;  %v480_v48 = vpop.f32.mrb[10].mxu1 }
 0x3d0   : > { %v483_v49 = vmax.f32 %v477_v45, 0.0  ;;  %v481_v50 = vpop.f32.mrb[11].mxu1 }
 0x3d1   : > { %v484_v52 = vmax.f32 %v479_v47, 0.0 }
 0x3d2   : > { %v494_v53 = vmul.f32 %v492_v51, %v483_v49 }
 0x3d3   : > { %v495_v54 = vmul.f32 %v492_v51, %v484_v52 }
 0x3d4   : > { %v496_v55 = vrot.slane %v494_v53, 4 }
 0x3d5   : > { %v502_v56 = vrot.slane %v495_v54, 4 }
 0x3d6   : > { %v497_v57 = vadd.f32 %v496_v55, %v494_v53 }
 0x3d7   : > { %v503_v58 = vadd.f32 %v502_v56, %v495_v54 }
 0x3d8   : > { %v498_v59 = vrot.slane %v497_v57, 2 }
 0x3d9   : > { %v504_v60 = vrot.slane %v503_v58, 2 }
 0x3da   : > { %v499_v61 = vadd.f32 %v498_v59, %v497_v57 }
 0x3db   : > { %v505_v62 = vadd.f32 %v504_v60, %v503_v58 }
 0x3dc   : > { %v500_v63 = vrot.slane %v499_v61, 1 }
 0x3dd   : > { %v506_v2 = vrot.slane %v505_v62, 1 }
 0x3de   : > { %v501_v3 = vadd.f32 %v500_v63, %v499_v61 }
 0x3df   : > { %v507_v6 = vadd.f32 %v506_v2, %v505_v62 }
 0x3e0   : > { %v513_v7 = vadd.f32 %v511_v4, %v501_v3 }
 0x3e1   : > { %v514_v8 = vadd.f32 %v511_v4, %v507_v6 }
 0x3e2   : > { %v515_v9 = vsub.f32 0.0, %v513_v7 }
 0x3e3   : > { %v516_v10 = vsub.f32 0.0, %v514_v8 }
 0x3e4   : > { %v517_v11 = vmul.f32 1.442695, %v515_v9 }
 0x3e5   : > { %v519_v12 = vmul.f32 1.442695, %v516_v10 }
 0x3e6   : > { %711 = vpow2.f32 %v517_v11 }
 0x3e7   : > { %713 = vpow2.f32 %v519_v12 }
 0x3f0   : > { %v712_v13 = vpop.eup %711 }
 0x3f1   : > { %v714_v0 = vpop.eup %713  ;;  %v521_v14 = vadd.f32 1.0, %v712_v13 }
 0x3f2   : > { %v522_v15 = vadd.f32 1.0, %v714_v0 }
 0x3f3   : > { %715 = vrcp.f32 %v521_v14 }
 0x3f4   : > { %717 = vrcp.f32 %v522_v15 }
 0x3fd   : > { %v716_v21 = vpop.eup %715 }
 0x3fe   : > { %v718_v23 = vpop.eup %717 }
 0x3ff   : > { %v527_v24 = vcombine.low %v716_v21, %v718_v23 }
 0x401   : > { %v534_v5 = vrot.slane %v527_v24, %v533_v22 }
 0x403   : > { %v541_v25 = vrot.slane %v534_v5, %v533_v22 }
 0x405   : > { %547 = vst.msk [vmem:[%s137_s26] sm:$0x3] %vm545_vm3, %v541_v25 }
 0x406   : > { %732 = shalt.err (!%p729_p3)
}
 0x407   : > { %s733_s21 = scalar_lea.hbm %s956_s30, 32  ;;  %s737_s14 = scalar_lea.hbm %s1000_s2, 64 }
 0x408   : > { %p734_p4 = scmp.ne.s32.totalorder %s956_s30, %s733_s21  ;;  %p738_p9 = scmp.lt.u32.totalorder %s956_s30, %s1000_s2 }
 0x409   : > { %p739_p10 = scmp.lt.u32.totalorder %s737_s14, %s733_s21  ;;  %p741_p12 = scmp.lt.u32.totalorder %s733_s21, %s956_s30 }
 0x40a   : > { %p735_p7 = pnand %p734_p4, %p836_p5 }
 0x40b   : > { %p740_p11 = por %p739_p10, %p738_p9 }
 0x40c   : > { %p736_p8 = pneg %p735_p7 }
 0x40d   : > { %p742_p13 = por %p741_p12, %p740_p11 }
 0x40f   : > { %p743_p0 = pnand %p742_p13, %p736_p8 }
 0x411   : > { %746 = shalt.err (!%p743_p0)
}
 0x412   : > { %668 = dma.vmem_to_hbm [thread:$0]  (%p836_p5), %s958_s27, 32, %s956_s30, %s549_s3  }
 0x413 PF: > { %p674_p1 = scmp.ge.s32.totalorder %s781_s12, 2  ;;  %s575_s22 = sand.u32 1, %s769_s9  }
 0x414   : > { %s576_s23 = scalar_lea.sflag [#allocation3], %s575_s22 }
 0x415   : > { %p671_p2 = pnand %p674_p1, %p840_p6 }
 0x417   : > { %764 = dma.done.wait (!%p671_p2), %s576_s23, 32  }
 0x418   : > { %766 = vsyncadd (!%p671_p2), %s576_s23, 4294967264  ;;  %p12_p3 = scmp.ge.s32.totalorder %s824_s15, 4   ;;  %s1003_s9 = smov %s773_s10 }
 0x419   : > { %s1004_s10 = smov %s777_s11  ;;  %s1005_s11 = smov %s834_s18 }
 0x41a   : > { %s1006_s12 = smov %s824_s15  ;;  %14 = sbr.rel (!%p12_p3) target bundleno = 3 (0x3), region = 63 }
 0x421   :  { %581 = vsyncpa [#allocation3], 1 }
 0x422   :  { %583 = vsyncpa [#allocation3 + $0x1], 1 }

// kernel: tpu_custom_call.1
= control target key start
LH: loop header
LB: loop body
LE: loop exit
PB: predicated region body
PF: predicated region fallthrough
CT: control target
= control target key end

     0   :  { %7 = vsyncpa [#allocation4], 0  ;;  %s862_s0 = inlined_call_operand.vmem [shape: bf16[160,16], index: 0, kind: input, shape index: {}]   ;;  %s863_s1 = inlined_call_operand.vmem [shape: f32[16,512], index: 1, kind: input, shape index: {}]   ;;  %s864_s2 = inlined_call_operand.hbm [shape: f32[1,512], index: 2, kind: output, shape index: {}]  }
   0x1   :  { %9 = vsyncpa [#allocation4 + $0x1], 0  ;;  %s719_s9 = smov 0   ;;  %s721_s10 = smov 0  }
   0x2   :  { %s723_s11 = smov 0   ;;  %s725_s12 = smov 0  }
   0x3 LB: > { %s562_s13 = sadd.s32 4294967295, %s699_s12   ;;  %s563_s14 = sadd.s32 4294967294, %s699_s12   ;;  %s699_s12 = sphi %s725_s12, %s870_s12   ;;  %s695_s11 = sphi %s723_s11, %s869_s11   ;;  %s691_s10 = sphi %s721_s10, %s868_s10   ;;  %s687_s9 = sphi %s719_s9, %s867_s9  }
   0x4   : > { %s742_s15 = sadd.s32 1, %s699_s12   ;;  %s43_s16 = sadd.s32 1, %s695_s11 }
   0x5   : > { %s40_s17 = ssub.s32 %s699_s12, %s742_s15  ;;  %p50_p0 = scmp.ne.s32.totalorder %s695_s11, %s691_s10 }
   0x6   : > { %p41_p1 = scmp.eq.s32.totalorder %s40_s17, 0  ;;  %p51_p2 = scmp.eq.s32.totalorder %s699_s12, 0 }
   0x7   : > { %p80_p3 = scmp.eq.s32.totalorder %s562_s13, 1  ;;  %p85_p4 = scmp.ne.s32.totalorder %s691_s10, %s687_s9 }
   0x8   : > { %s755_s18 = scalar_select %p41_p1, %s695_s11, %s43_s16  }
   0x9   : > { %p52_p5 = por %p51_p2, %p50_p0  ;;  %p757_p6 = por %p80_p3, %p50_p0 }
   0xa   : > { %p86_p7 = scmp.eq.s32.totalorder %s563_s14, 1  ;;  %p565_p9 = scmp.ge.s32.totalorder %s699_s12, 2 }
   0xc   : > { %p761_p8 = por %p86_p7, %p85_p4  ;;  %105 = sbr.rel (%p565_p9) target bundleno = 26 (0x1a), region = 20 }
  0x13   : > { %108 = sbr.rel (!%p52_p5) target bundleno = 26 (0x1a), region = 24  ;;  %s110_s21 = sand.u32 (%p52_p5), 1, %s695_s11  }
  0x14   : > { %s584_s22 = sshll.u32 (%p52_p5), %s699_s12, 4  ;;  %s566_s23 = sshll.u32 (%p52_p5), %s110_s21, 5 }
  0x15   : > { %s115_s26 = scalar_lea.vmem (%p52_p5), %s863_s1, %s584_s22  ;;  %s112_s27 = scalar_lea.vmem (%p52_p5), [#allocation2], %s566_s23 }
  0x16   : > { %v128_v0 = vld [vmem:[%s115_s26] sm:$0xff] (%p52_p5)  ;;  %v130_v1 = vld [vmem:[%s115_s26 + $0x8] sm:$0xff] (%p52_p5) }
  0x17   : > { %v132_v2 = vld [vmem:[%s115_s26 + $0x20] sm:$0xff] (%p52_p5)  ;;  %129 = vst [vmem:[%s112_s27] sm:$0xff] (%p52_p5), %v128_v0  ;;  %131 = vst [vmem:[%s112_s27 + $0x8] sm:$0xff] (%p52_p5), %v130_v1  ;;  %v134_v3 = vld [vmem:[%s115_s26 + $0x28] sm:$0xff] (%p52_p5) }
  0x18   : > { %133 = vst [vmem:[%s112_s27 + $0x10] sm:$0xff] (%p52_p5), %v132_v2  ;;  %135 = vst [vmem:[%s112_s27 + $0x18] sm:$0xff] (%p52_p5), %v134_v3 }
  0x1a PF: > { %p569_p10 = scmp.ge.s32.totalorder %s699_s12, 1  ;;  %p140_p11 = scmp.lt.s32.totalorder %s699_s12, 3 }
  0x1c   : > { %p141_p12 = pnand %p569_p10, %p140_p11 }
  0x1d   : > { %s776_s28 = sand.u32 (!%p141_p12), 1, %s691_s10   ;;  %v701_v4 = vmov (!%p141_p12), 0   ;;  %v178_v5 = vld [vmem:[%s862_s0 + $0x28] ss:$8 sps:$4 sm:$0xff] (!%p141_p12)   ;;  %v420_v14 = vld [vmem:[%s862_s0 + $0x20] ss:$24 sps:$4 sm:$0xff] (!%p141_p12)  }
  0x1e   : > { %144 = sbr.rel (%p141_p12) target bundleno = 989 (0x3dd), region = 47  ;;  %s570_s29 = sshll.u32 (!%p141_p12), %s776_s28, 5  ;;  %221 = vmatprep.mubr.bf16.mxu0 (!%p141_p12), %v701_v4  ;;  %627 = vset.pattern.permute.xlu0 (!%p141_p12), %v701_v4  ;;  %v179_v6 = vunpack.c.l.bf16 (!%p141_p12), %v178_v5  ;;  %v236_v12 = vunpack.c.h.bf16 (!%p141_p12), %v178_v5  ;;  %v177_v15 = vld [vmem:[%s862_s0] sm:$0xf] (!%p141_p12)  ;;  %vm185_vm0 = vcmask (!%p141_p12), 130048   ;;  %v421_v16 = vunpack.c.l.bf16 (!%p141_p12), %v420_v14 }
  0x1f   : > { %285 = vmatprep.mubr.bf16.mxu1 (!%p141_p12), %v701_v4  ;;  %628 = vset.pattern.permute.xlu1 (!%p141_p12), %v701_v4  ;;  %s149_s4 = scalar_lea.vmem (!%p141_p12), [#allocation2], %s570_s29  ;;  %vm246_vm1 = vcmask (!%p141_p12), 1043456   ;;  %v232_v29 = vld [vmem:[%s862_s0 + $0x8] sm:$0xf] (!%p141_p12)  ;;  %vm242_vm2 = vcmask (!%p141_p12), 64512   ;;  %v300_v30 = vunpack.c.h.bf16 (!%p141_p12), %v420_v14  ;;  %s571_s29 = sshll.u32 (!%p141_p12), %s776_s28, 1 }
  0x20   : > { %v172_v7 = vld [vmem:[%s149_s4 + $0x8] sm:$0xff] (!%p141_p12)  ;;  %v174_v8 = vld [vmem:[%s149_s4 + $0x18] sm:$0xff] (!%p141_p12)  ;;  %v171_v9 = vld [vmem:[%s149_s4] sm:$0xff] (!%p141_p12)  ;;  %182 = vperm.xlu0 (!%p141_p12), %627, %v179_v6   ;;  %s585_s30 = sshll.u32 (!%p141_p12), %s562_s13, 5  ;;  %s167_s3 = scalar_lea.vmem (!%p141_p12), [#allocation3], %s571_s29 }
  0x21   : > { %v176_v10 = vpack.c.bf16 (!%p141_p12), %v174_v8, %v172_v7  ;;  %v173_v11 = vld [vmem:[%s149_s4 + $0x10] sm:$0xff] (!%p141_p12)  ;;  %v361_v31 = vld [vmem:[%s862_s0 + $0x40] sm:$0xf] (!%p141_p12)  ;;  %303 = vperm.xlu1 (!%p141_p12), %628, %v300_v30   ;;  %v422_v33 = vld [vmem:[%s862_s0 + $0x48] sm:$0x1] (!%p141_p12)  ;;  %s498_s4 = sshll.u32 (!%p141_p12), %s167_s3, 4  ;;  %s818_s7 = scalar_lea.hbm (!%p141_p12), %s864_s2, %s585_s30  ;;  %s820_s4 = int_to_ptr.vmem [resolvable:$true] %s498_s4 }
  0x22   : > { %v175_v13 = vpack.c.bf16 (!%p141_p12), %v173_v11, %v171_v9  ;;  %v362_v32 = vunpack.c.l.bf16 (!%p141_p12), %v361_v31  ;;  %v423_v34 = vunpack.c.l.bf16 (!%p141_p12), %v422_v33  ;;  %v296_v47 = vld [vmem:[%s862_s0 + $0x10] sm:$0xf] (!%p141_p12)  ;;  %v358_v60 = vld [vmem:[%s862_s0 + $0x18] sm:$0xf] (!%p141_p12)  ;;  %s484_s8 = scalar_lea.sflag (!%p141_p12), [#allocation4], %s776_s28  ;;  %s637_s14 = scalar_lea.vmem (!%p141_p12), %s820_s4, 32 }
  0x23   : > { %189 = vmatprep.subr.bf16.mxu0 (!%p141_p12), %v176_v10  ;;  %p638_p13 = scmp.ne.s32.totalorder (!%p141_p12), %s820_s4, %s637_s14  ;;  %s703_s13 = smov (!%p141_p12), [#allocation3]  }
  0x24   : > { %190 = vmatpush1.bf16.msra.mxu0 (!%p141_p12), %v175_v13  ;;  %239 = vperm.xlu0 (!%p141_p12), %627, %v236_v12   ;;  %s641_s16 = sshll.u32 (!%p141_p12), %s703_s13, 4  ;;  %s642_s16 = int_to_ptr.vmem [resolvable:$false] %s641_s16 }
  0x25   : > { %365 = vperm.xlu1 %628, %v362_v32   ;;  %v702_v32 = vmov 1966171168   ;;  %p639_p0 = pnand %p638_p13, %p757_p6  ;;  %s643_s17 = scalar_lea.vmem %s642_s16, 64 }
  0x26   : > { %v464_v33 = vunpack.c.l.s4 %v702_v32  ;;  %p644_p2 = scmp.lt.s32.totalorder %s820_s4, %s642_s16  ;;  %p645_p3 = scmp.lt.s32.totalorder %s643_s17, %s637_s14 }
  0x27   : > { %572 = vmatmul.mubr.msk.bf16.vlgmr.msra.gmra.mrb[0].mxu0 %vm185_vm0, %v177_v15  ;;  %p640_p1 = pneg %p639_p0 }
  0x28   : > { %347 = vmatprep.mubr.bf16.mxu0 %v701_v4  ;;  %426 = vperm.xlu0 %627, %v421_v16   ;;  %p646_p4 = por %p645_p3, %p644_p2 }
  0x29   : > { %445 = vperm.xlu1 %628, %v423_v34   ;;  %v466_v34 = vlaneseq }
  0x2a   : > { %p647_p5 = pnand %p646_p4, %p640_p1 }
  0x2b   : > { %vm480_vm3 = vcmp.lt.s32.totalorder %v466_v34, 256 }
  0x9f   : > { %v183_v17 = vpop.permute.xlu0 %182 }
  0xa0   : > { %v304_v48 = vpop.permute.xlu1 %303 }
  0xa3   : > { %v240_v35 = vpop.permute.xlu0 %239 }
  0xa4   : > { %v366_v61 = vpop.permute.xlu1 %365 }
  0xa7   : > { %v427_v5 = vpop.permute.xlu0 %426 }
  0xfa   : > { %v223_v18 = vpop.f32.mrb[0].mxu0 }
  0xfb   : > { %v224_v19 = vadd.f32 %v223_v18, %v183_v17  ;;  %v225_v20 = vpop.f32.mrb[1].mxu0 }
  0xfc   : > { %v226_v21 = vadd.f32 %v225_v20, %v183_v17  ;;  %v227_v22 = vpop.f32.mrb[2].mxu0  ;;  %v446_v20 = vpop.permute.xlu1 %445 }
  0xfd   : > { %v230_v23 = vmax.f32 %v224_v19, 0.0  ;;  %v228_v24 = vpop.f32.mrb[3].mxu0 }
  0xfe   : > { %v231_v25 = vmax.f32 %v226_v21, 0.0 }
  0xff   : > { %v233_v26 = vpack.c.bf16 %v230_v23, %v230_v23 }
 0x100   : > { %v234_v27 = vpack.c.bf16 %v231_v25, %v231_v25 }
 0x101   : > { %v248_v28 = vsel %vm246_vm1, %v233_v26, 0 }
 0x102   : > { %573 = vmatprep.subr.msk.bf16.mxu1 %vm246_vm1, %v234_v27 }
 0x103   : > { %254 = vmatpush1.bf16.msra.mxu1 %v248_v28 }
 0x106   : > { %574 = vmatmul.mubr.msk.bf16.vlgmr.msra.gmra.mrb[0].mxu1 %vm242_vm2, %v232_v29 }
 0x107   : > { %409 = vmatprep.mubr.bf16.mxu1 %v701_v4 }
 0x1d9   : > { %v287_v36 = vpop.f32.mrb[0].mxu1 }
 0x1da   : > { %v288_v37 = vadd.f32 %v287_v36, %v240_v35  ;;  %v289_v38 = vpop.f32.mrb[1].mxu1  ;;  %v467_v36 = vshrl.u32 %v466_v34, 7 }
 0x1db   : > { %v290_v39 = vadd.f32 %v289_v38, %v240_v35  ;;  %v291_v40 = vpop.f32.mrb[2].mxu1  ;;  %v465_v35 = vunpack.c.0.s8 %v464_v33 }
 0x1dc   : > { %v294_v41 = vmax.f32 %v288_v37, 0.0  ;;  %v292_v42 = vpop.f32.mrb[3].mxu1 }
 0x1dd   : > { %v295_v43 = vmax.f32 %v290_v39, 0.0  ;;  %v468_v38 = vsub.s32 %v465_v35, %v467_v36 }
 0x1de   : > { %v297_v44 = vpack.c.bf16 %v294_v41, %v294_v41 }
 0x1df   : > { %v298_v45 = vpack.c.bf16 %v295_v43, %v295_v43 }
 0x1e0   : > { %v310_v46 = vsel %vm246_vm1, %v297_v44, 0 }
 0x1e1   : > { %575 = vmatprep.subr.msk.bf16.mxu0 %vm246_vm1, %v298_v45 }
 0x1e2   : > { %316 = vmatpush1.bf16.msra.mxu0 %v310_v46 }
 0x1e5   : > { %576 = vmatmul.mubr.msk.bf16.vlgmr.msra.gmra.mrb[4].mxu0 %vm242_vm2, %v296_v47 }
 0x2b8   : > { %v349_v49 = vpop.f32.mrb[4].mxu0 }
 0x2b9   : > { %v350_v50 = vadd.f32 %v349_v49, %v304_v48  ;;  %v351_v51 = vpop.f32.mrb[5].mxu0 }
 0x2ba   : > { %v352_v52 = vadd.f32 %v351_v51, %v304_v48  ;;  %v353_v53 = vpop.f32.mrb[6].mxu0 }
 0x2bb   : > { %v356_v54 = vmax.f32 %v350_v50, 0.0  ;;  %v354_v55 = vpop.f32.mrb[7].mxu0 }
 0x2bc   : > { %v357_v56 = vmax.f32 %v352_v52, 0.0 }
 0x2bd   : > { %v359_v57 = vpack.c.bf16 %v356_v54, %v356_v54 }
 0x2be   : > { %v360_v58 = vpack.c.bf16 %v357_v56, %v357_v56 }
 0x2bf   : > { %v372_v59 = vsel %vm246_vm1, %v359_v57, 0 }
 0x2c0   : > { %577 = vmatprep.subr.msk.bf16.mxu1 %vm246_vm1, %v360_v58 }
 0x2c1   : > { %378 = vmatpush1.bf16.msra.mxu1 %v372_v59 }
 0x2c4   : > { %578 = vmatmul.mubr.msk.bf16.vlgmr.msra.gmra.mrb[4].mxu1 %vm242_vm2, %v358_v60 }
 0x397   : > { %v411_v62 = vpop.f32.mrb[4].mxu1 }
 0x398   : > { %v412_v63 = vadd.f32 %v411_v62, %v366_v61  ;;  %v413_v0 = vpop.f32.mrb[5].mxu1 }
 0x399   : > { %v414_v1 = vadd.f32 %v413_v0, %v366_v61  ;;  %v415_v2 = vpop.f32.mrb[6].mxu1 }
 0x39a   : > { %v418_v3 = vmax.f32 %v412_v63, 0.0  ;;  %v416_v4 = vpop.f32.mrb[7].mxu1 }
 0x39b   : > { %v419_v6 = vmax.f32 %v414_v1, 0.0 }
 0x39c   : > { %v429_v7 = vmul.f32 %v427_v5, %v418_v3 }
 0x39d   : > { %v430_v8 = vmul.f32 %v427_v5, %v419_v6 }
 0x39e   : > { %v431_v9 = vrot.slane %v429_v7, 4 }
 0x39f   : > { %v437_v10 = vrot.slane %v430_v8, 4 }
 0x3a0   : > { %v432_v11 = vadd.f32 %v431_v9, %v429_v7 }
 0x3a1   : > { %v438_v12 = vadd.f32 %v437_v10, %v430_v8 }
 0x3a2   : > { %v433_v13 = vrot.slane %v432_v11, 2 }
 0x3a3   : > { %v439_v14 = vrot.slane %v438_v12, 2 }
 0x3a4   : > { %v434_v15 = vadd.f32 %v433_v13, %v432_v11 }
 0x3a5   : > { %v440_v16 = vadd.f32 %v439_v14, %v438_v12 }
 0x3a6   : > { %v435_v17 = vrot.slane %v434_v15, 1 }
 0x3a7   : > { %v441_v18 = vrot.slane %v440_v16, 1 }
 0x3a8   : > { %v436_v19 = vadd.f32 %v435_v17, %v434_v15 }
 0x3a9   : > { %v442_v21 = vadd.f32 %v441_v18, %v440_v16 }
 0x3aa   : > { %v448_v22 = vadd.f32 %v446_v20, %v436_v19 }
 0x3ab   : > { %v449_v23 = vadd.f32 %v446_v20, %v442_v21 }
 0x3ac   : > { %v450_v24 = vsub.f32 0.0, %v448_v22 }
 0x3ad   : > { %v451_v25 = vsub.f32 0.0, %v449_v23 }
 0x3ae   : > { %v452_v26 = vmul.f32 1.442695, %v450_v24 }
 0x3af   : > { %v454_v27 = vmul.f32 1.442695, %v451_v25 }
 0x3b0   : > { %629 = vpow2.f32 %v452_v26 }
 0x3b1   : > { %631 = vpow2.f32 %v454_v27 }
 0x3ba   : > { %v630_v28 = vpop.eup %629 }
 0x3bb   : > { %v632_v29 = vpop.eup %631  ;;  %v456_v30 = vadd.f32 1.0, %v630_v28 }
 0x3bc   : > { %v457_v31 = vadd.f32 1.0, %v632_v29 }
 0x3bd   : > { %633 = vrcp.f32 %v456_v30 }
 0x3be   : > { %635 = vrcp.f32 %v457_v31 }
 0x3c7   : > { %v634_v37 = vpop.eup %633 }
 0x3c8   : > { %v636_v39 = vpop.eup %635 }
 0x3c9   : > { %v462_v40 = vcombine.low %v634_v37, %v636_v39 }
 0x3cb   : > { %v469_v41 = vrot.slane %v462_v40, %v468_v38 }
 0x3cd   : > { %v476_v42 = vrot.slane %v469_v41, %v468_v38 }
 0x3cf   : > { %482 = vst.msk [vmem:[%s167_s3] sm:$0x3] %vm480_vm3, %v476_v42 }
 0x3d0   : > { %650 = shalt.err (!%p647_p5)
}
 0x3d1   : > { %s651_s28 = scalar_lea.hbm %s818_s7, 32  ;;  %s655_s23 = scalar_lea.hbm %s864_s2, 64 }
 0x3d2   : > { %p652_p7 = scmp.ne.s32.totalorder %s818_s7, %s651_s28  ;;  %p656_p12 = scmp.lt.u32.totalorder %s818_s7, %s864_s2 }
 0x3d3   : > { %p657_p13 = scmp.lt.u32.totalorder %s655_s23, %s651_s28  ;;  %p659_p1 = scmp.lt.u32.totalorder %s651_s28, %s818_s7 }
 0x3d4   : > { %p653_p10 = pnand %p652_p7, %p757_p6 }
 0x3d5   : > { %p658_p0 = por %p657_p13, %p656_p12 }
 0x3d6   : > { %p654_p11 = pneg %p653_p10 }
 0x3d7   : > { %p660_p2 = por %p659_p1, %p658_p0 }
 0x3d9   : > { %p661_p3 = pnand %p660_p2, %p654_p11 }
 0x3db   : > { %664 = shalt.err (!%p661_p3)
}
 0x3dc   : > { %586 = dma.vmem_to_hbm [thread:$0]  (%p757_p6), %s820_s4, 32, %s818_s7, %s484_s8  }
 0x3dd PF: > { %s510_s26 = sand.u32 1, %s687_s9   ;;  %p589_p4 = pnand %p565_p9, %p761_p8 }
 0x3de   : > { %s511_s27 = scalar_lea.sflag [#allocation4], %s510_s26 }
 0x3df   : > { %682 = dma.done.wait (!%p589_p4), %s511_s27, 32  }
 0x3e0   : > { %684 = vsyncadd (!%p589_p4), %s511_s27, 4294967264  ;;  %p12_p5 = scmp.ge.s32.totalorder %s742_s15, 4   ;;  %s867_s9 = smov %s691_s10 }
 0x3e1   : > { %s868_s10 = smov %s695_s11  ;;  %s869_s11 = smov %s755_s18 }
 0x3e2   : > { %s870_s12 = smov %s742_s15  ;;  %14 = sbr.rel (!%p12_p5) target bundleno = 3 (0x3), region = 91 }
 0x3e9   :  { %516 = vsyncpa [#allocation4], 1 }
 0x3ea   :  { %518 = vsyncpa [#allocation4 + $0x1], 1 }

</bundles_post_ra>
